<compile_context>
chip_gen: v7x
topology: tpu7x:2x2x1
jax: 0.10.0
libtpu: 0.0.40
codegen_flags: <defaults>
</compile_context>

<pallas_src>
import functools
import math

import jax
import jax.numpy as jnp
from jax import lax
from jax.experimental import pallas as pl
from jax.experimental.pallas import tpu as pltpu


# ----------------------------- tiling helpers ------------------------------ #

def _pick_tile(dim: int, preferred: int) -> int:
    """Largest tile <= preferred that evenly divides `dim`, preferring 128-multiples
    (MXU / lane alignment).  Falls back to the full dim (valid for BlockSpec)."""
    if dim <= preferred:
        return dim
    t = (preferred // 128) * 128
    while t >= 128:
        if dim % t == 0:
            return t
        t -= 128
    return dim


# ------------------------- tiled linear (MXU matmul) ------------------------ #

def _linear_kernel(x_ref, w_ref, b_ref, o_ref, acc_ref):
    # x: [tm, tk], w: [tn, tk] (PyTorch [out,in] layout), b: [1, tn] -> o: [tm, tn]
    @pl.when(pl.program_id(2) == 0)
    def _():
        acc_ref[...] = jnp.zeros_like(acc_ref)

    # Contract K dims directly; no transpose of either operand is needed.
    acc_ref[...] += lax.dot_general(
        x_ref[...], w_ref[...],
        dimension_numbers=(((1,), (1,)), ((), ())),
        preferred_element_type=jnp.float32)

    @pl.when(pl.program_id(2) == pl.num_programs(2) - 1)
    def _():
        o_ref[...] = (acc_ref[...] + b_ref[...]).astype(o_ref.dtype)


def linear_pallas(x2d, w, b, *, tm=256, tn=256, tk=512):
    """x2d: [M, K]; w: [N, K] (PyTorch layout); b: [N] -> [M, N]."""
    M, K = x2d.shape
    N = w.shape[0]
    tm = _pick_tile(M, tm)
    tn = _pick_tile(N, tn)
    tk = _pick_tile(K, tk)
    b2 = b.reshape(1, N)
    grid = (M // tm, N // tn, K // tk)
    return pl.pallas_call(
        _linear_kernel,
        out_shape=jax.ShapeDtypeStruct((M, N), x2d.dtype),
        grid_spec=pltpu.PrefetchScalarGridSpec(
            num_scalar_prefetch=0,
            grid=grid,
            in_specs=[pl.BlockSpec((tm, tk), lambda i, j, k: (i, k)),
                      pl.BlockSpec((tn, tk), lambda i, j, k: (j, k)),
                      pl.BlockSpec((1, tn), lambda i, j, k: (0, j))],
            out_specs=pl.BlockSpec((tm, tn), lambda i, j, k: (i, j)),
            scratch_shapes=[pltpu.VMEM((tm, tn), jnp.float32)]),
        compiler_params=pltpu.CompilerParams(
            dimension_semantics=("parallel", "parallel", "arbitrary"),
            vmem_limit_bytes=32 * 1024 * 1024),
    )(x2d, w, b2)


# --------------------- scaled dot-product attention ------------------------- #

def _attn_kernel(q_ref, k_ref, v_ref, m_ref, ctx_ref, attn_ref,
                 *, n_heads, d_k, d_v, inv_scale):
    # One batch element per grid step; all heads handled inside (static unroll),
    # so there is no per-head grid overhead and the mask is loaded once.
    mask = m_ref[0] != 0            # [Lq, Lk] bool (True == masked)
    q_all = q_ref[0]                # [Lq, H*d_k]  (projection layout, no transpose)
    k_all = k_ref[0]                # [Lk, H*d_k]
    v_all = v_ref[0]                # [Lk, H*d_v]

    for h in range(n_heads):        # static unroll over heads
        q = q_all[:, h * d_k:(h + 1) * d_k]            # [Lq, d_k]
        k = k_all[:, h * d_k:(h + 1) * d_k]            # [Lk, d_k]
        v = v_all[:, h * d_v:(h + 1) * d_v]            # [Lk, d_v]

        # scores = q @ k^T / sqrt(d_k)  (transpose-free contraction, scale folded)
        s = lax.dot_general(q, k, dimension_numbers=(((1,), (1,)), ((), ())),
                            preferred_element_type=jnp.float32) * inv_scale
        s = jnp.where(mask, jnp.float32(-1e9), s)      # masked_fill_(mask, -1e9)

        # numerically-stable softmax; EUP reciprocal instead of VALU divide
        s = s - jnp.max(s, axis=-1, keepdims=True)
        e = jnp.exp(s)
        p = e * pl.reciprocal(jnp.sum(e, axis=-1, keepdims=True), approx=True)

        attn_ref[0, h] = p.astype(attn_ref.dtype)      # [Lq, Lk] lane-dense store

        ctx = jnp.dot(p, v, preferred_element_type=jnp.float32)   # [Lq, d_v]
        # Lane-dense [B, Lq, H*d_v] context output: no post-kernel transpose.
        ctx_ref[0, :, h * d_v:(h + 1) * d_v] = ctx.astype(ctx_ref.dtype)


def attention_pallas(q_p, k_p, v_p, mask, *, n_heads, d_k, d_v):
    """q_p: [B, Lq, H*d_k]; k_p/v_p: [B, Lk, H*d]; mask: [B, Lq, Lk] int8."""
    B, Lq, _ = q_p.shape
    Lk = k_p.shape[1]
    kernel = functools.partial(_attn_kernel, n_heads=n_heads, d_k=d_k, d_v=d_v,
                               inv_scale=float(1.0 / math.sqrt(d_k)))
    ctx, attn = pl.pallas_call(
        kernel,
        out_shape=(jax.ShapeDtypeStruct((B, Lq, n_heads * d_v), q_p.dtype),
                   jax.ShapeDtypeStruct((B, n_heads, Lq, Lk), jnp.float32)),
        grid_spec=pltpu.PrefetchScalarGridSpec(
            num_scalar_prefetch=0,
            grid=(B,),
            in_specs=[pl.BlockSpec((1, Lq, n_heads * d_k), lambda b: (b, 0, 0)),
                      pl.BlockSpec((1, Lk, n_heads * d_k), lambda b: (b, 0, 0)),
                      pl.BlockSpec((1, Lk, n_heads * d_v), lambda b: (b, 0, 0)),
                      pl.BlockSpec((1, Lq, Lk), lambda b: (b, 0, 0))],
            out_specs=(pl.BlockSpec((1, Lq, n_heads * d_v), lambda b: (b, 0, 0)),
                       pl.BlockSpec((1, n_heads, Lq, Lk), lambda b: (b, 0, 0, 0)))),
        compiler_params=pltpu.CompilerParams(
            dimension_semantics=("parallel",),
            vmem_limit_bytes=32 * 1024 * 1024),
    )(q_p, k_p, v_p, mask)
    return ctx, attn


# ------------------------------ module wrapper ------------------------------ #

def init_params(key, d_k, d_v, d_model, n_heads):
    ks = jax.random.split(key, 6)
    scale = 0.1
    return {
        "w_q": scale * jax.random.normal(ks[0], (d_k * n_heads, d_model), jnp.float32),
        "b_q": scale * jax.random.normal(ks[3], (d_k * n_heads,), jnp.float32),
        "w_k": scale * jax.random.normal(ks[1], (d_k * n_heads, d_model), jnp.float32),
        "b_k": scale * jax.random.normal(ks[4], (d_k * n_heads,), jnp.float32),
        "w_v": scale * jax.random.normal(ks[2], (d_v * n_heads, d_model), jnp.float32),
        "b_v": scale * jax.random.normal(ks[5], (d_v * n_heads,), jnp.float32),
    }


def multi_head_attention(params, q, k, v, attn_mask, *, d_k, d_v, n_heads):
    """q/k/v: [B, L, d_model]; attn_mask: [B, Lq, Lk] (truthy == masked) or None.
    Returns (context [B, Lq, n_heads*d_v], attn [B, n_heads, Lq, Lk])."""
    B, Lq, d_model = q.shape
    Lk = k.shape[1]

    # QKV projections (tiled Pallas MXU matmuls, no weight transpose in JAX)
    q_p = linear_pallas(q.reshape(B * Lq, d_model), params["w_q"], params["b_q"])
    k_p = linear_pallas(k.reshape(B * Lk, d_model), params["w_k"], params["b_k"])
    v_p = linear_pallas(v.reshape(B * Lk, d_model), params["w_v"], params["b_v"])

    # Keep the projection layout [B, L, H*d]; head split happens inside the kernel,
    # so no [B,L,H,d] -> [B,H,L,d] HBM transposes are needed.
    q_p = q_p.reshape(B, Lq, n_heads * d_k)
    k_p = k_p.reshape(B, Lk, n_heads * d_k)
    v_p = v_p.reshape(B, Lk, n_heads * d_v)

    if attn_mask is not None:
        mask = attn_mask.astype(jnp.int8)                # per-batch, 1 byte/elem
    else:
        mask = jnp.zeros((B, Lq, Lk), jnp.int8)

    ctx, attn = attention_pallas(q_p, k_p, v_p, mask,
                                 n_heads=n_heads, d_k=d_k, d_v=d_v)
    # ctx is already [B, Lq, n_heads*d_v], matching
    # context.transpose(1, 2).contiguous().view(b, -1, H*d_v) in the PyTorch module.
    return ctx, attn


# ---------------------------------- main ------------------------------------ #

if __name__ == "__main__":
    B, L = 2, 8
    d_model, n_heads, d_k, d_v = 32, 4, 8, 8

    key = jax.random.PRNGKey(0)
    kq, kk, kv, kp = jax.random.split(key, 4)
    q = jax.random.normal(kq, (B, L, d_model), jnp.float32)
    k = jax.random.normal(kk, (B, L, d_model), jnp.float32)
    v = jax.random.normal(kv, (B, L, d_model), jnp.float32)
    # causal mask: True == masked (filled with -1e9 before softmax)
    attn_mask = jnp.broadcast_to(
        jnp.triu(jnp.ones((L, L), dtype=bool), k=1)[None], (B, L, L))

    params = init_params(kp, d_k, d_v, d_model, n_heads)

    ctx, attn = multi_head_attention(params, q, k, v, attn_mask,
                                     d_k=d_k, d_v=d_v, n_heads=n_heads)
    ctx = jax.block_until_ready(ctx)
    attn = jax.block_until_ready(attn)

    # lightweight sanity check against a pure-JAX reference of the PyTorch module
    def ref_forward(params, q, k, v, mask):
        def lin(x, w, b):
            return x @ w.T + b
        qs = lin(q, params["w_q"], params["b_q"]).reshape(B, L, n_heads, d_k).transpose(0, 2, 1, 3)
        ks = lin(k, params["w_k"], params["b_k"]).reshape(B, L, n_heads, d_k).transpose(0, 2, 1, 3)
        vs = lin(v, params["w_v"], params["b_v"]).reshape(B, L, n_heads, d_v).transpose(0, 2, 1, 3)
        sc = jnp.einsum("bhqd,bhkd->bhqk", qs, ks) / math.sqrt(d_k)
        sc = jnp.where(mask[:, None], -1e9, sc)
        a = jax.nn.softmax(sc, axis=-1)
        c = jnp.einsum("bhqk,bhkd->bhqd", a, vs).transpose(0, 2, 1, 3).reshape(B, L, n_heads * d_v)
        return c, a

    ref_ctx, ref_attn = ref_forward(params, q, k, v, attn_mask)
    # tolerance accounts for the EUP approximate reciprocal in the softmax denom
    assert jnp.allclose(ctx, ref_ctx, atol=2e-3, rtol=2e-3), \
        float(jnp.max(jnp.abs(ctx - ref_ctx)))
    assert jnp.allclose(attn, ref_attn, atol=2e-3, rtol=2e-3), \
        float(jnp.max(jnp.abs(attn - ref_attn)))

    print("KERNEL_OK")
</pallas_src>

<mosaic_0001>
module attributes {stable_mosaic.version = 11 : i64} {
  func.func @_linear_kernel(%arg0: i32, %arg1: i32, %arg2: i32, %arg3: memref<16x32xf32, #tpu.memory_space<vmem>>, %arg4: memref<32x32xf32, #tpu.memory_space<vmem>>, %arg5: memref<1x32xf32, #tpu.memory_space<vmem>>, %arg6: memref<16x32xf32, #tpu.memory_space<vmem>>, %arg7: memref<16x32xf32, #tpu.memory_space<vmem>>) attributes {dimension_semantics = [#tpu.dimension_semantics<parallel>, #tpu.dimension_semantics<parallel>, #tpu.dimension_semantics<arbitrary>], iteration_bounds = array<i64: 1, 1, 1>, scalar_prefetch = 0 : i64, scratch_operands = 1 : i64, tpu.core_type = #tpu.core_type<tc>, window_params = [{transform_indices = @transform_0, window_bounds = array<i64: 16, 32>}, {transform_indices = @transform_1, window_bounds = array<i64: 32, 32>}, {transform_indices = @transform_2, window_bounds = array<i64: 1, 32>}, {transform_indices = @transform_3, window_bounds = array<i64: 16, 32>}]} {
    %c0_i32 = arith.constant 0 : i32
    %0 = arith.cmpi eq, %arg2, %c0_i32 : i32
    %1 = arith.extui %0 : i1 to i32
    %c0_i32_0 = arith.constant 0 : i32
    %2 = arith.cmpi ne, %1, %c0_i32_0 : i32
    scf.if %2 {
      %cst_10 = arith.constant 0.000000e+00 : f32
      %12 = vector.broadcast %cst_10 : f32 to vector<16x32xf32>
      %c0_11 = arith.constant 0 : index
      %c0_12 = arith.constant 0 : index
      %13 = vector.load %arg7[%c0_11, %c0_12] : memref<16x32xf32, #tpu.memory_space<vmem>>, vector<16x32xf32>
      tpu.vector_store %arg7[%c0_11, %c0_12], %12 {strides = array<i32>} : memref<16x32xf32, #tpu.memory_space<vmem>>, vector<16x32xf32>,
    } else {
    }
    %c0 = arith.constant 0 : index
    %c0_1 = arith.constant 0 : index
    %3 = vector.load %arg7[%c0, %c0_1] : memref<16x32xf32, #tpu.memory_space<vmem>>, vector<16x32xf32>
    %c0_2 = arith.constant 0 : index
    %c0_3 = arith.constant 0 : index
    %4 = vector.load %arg3[%c0_2, %c0_3] : memref<16x32xf32, #tpu.memory_space<vmem>>, vector<16x32xf32>
    %c0_4 = arith.constant 0 : index
    %c0_5 = arith.constant 0 : index
    %5 = vector.load %arg4[%c0_4, %c0_5] : memref<32x32xf32, #tpu.memory_space<vmem>>, vector<32x32xf32>
    %cst = arith.constant dense<0.000000e+00> : vector<16x32xf32>
    %6 = tpu.matmul %4, %5, %cst {dimension_numbers = #tpu.dot_dimension_numbers<[1], [1], [0], [0], [0, 0, 1, 0], [], []>} : vector<16x32xf32>, vector<32x32xf32>, vector<16x32xf32> -> vector<16x32xf32>
    %7 = arith.addf %3, %6 : vector<16x32xf32>
    %c0_6 = arith.constant 0 : index
    %c0_7 = arith.constant 0 : index
    %8 = vector.load %arg7[%c0_6, %c0_7] : memref<16x32xf32, #tpu.memory_space<vmem>>, vector<16x32xf32>
    tpu.vector_store %arg7[%c0_6, %c0_7], %7 {strides = array<i32>} : memref<16x32xf32, #tpu.memory_space<vmem>>, vector<16x32xf32>,
    %c0_i32_8 = arith.constant 0 : i32
    %9 = arith.cmpi eq, %arg2, %c0_i32_8 : i32
    %10 = arith.extui %9 : i1 to i32
    %c0_i32_9 = arith.constant 0 : i32
    %11 = arith.cmpi ne, %10, %c0_i32_9 : i32
    scf.if %11 {
      %c0_10 = arith.constant 0 : index
      %c0_11 = arith.constant 0 : index
      %12 = vector.load %arg7[%c0_10, %c0_11] : memref<16x32xf32, #tpu.memory_space<vmem>>, vector<16x32xf32>
      %c0_12 = arith.constant 0 : index
      %c0_13 = arith.constant 0 : index
      %13 = vector.load %arg5[%c0_12, %c0_13] : memref<1x32xf32, #tpu.memory_space<vmem>>, vector<1x32xf32>
      %14 = vector.broadcast %13 : vector<1x32xf32> to vector<16x32xf32>
      %15 = arith.addf %12, %14 : vector<16x32xf32>
      %c0_14 = arith.constant 0 : index
      %c0_15 = arith.constant 0 : index
      %16 = vector.load %arg6[%c0_14, %c0_15] : memref<16x32xf32, #tpu.memory_space<vmem>>, vector<16x32xf32>
      tpu.vector_store %arg6[%c0_14, %c0_15], %15 {strides = array<i32>} : memref<16x32xf32, #tpu.memory_space<vmem>>, vector<16x32xf32>,
    } else {
    }
    return
  }
  func.func @transform_0(%arg0: i32, %arg1: i32, %arg2: i32) -> (i32, i32) {
    %c0_i32 = arith.constant 0 : i32
    return %arg0, %arg2 : i32, i32
  }
  func.func @transform_1(%arg0: i32, %arg1: i32, %arg2: i32) -> (i32, i32) {
    %c0_i32 = arith.constant 0 : i32
    return %arg1, %arg2 : i32, i32
  }
  func.func @transform_2(%arg0: i32, %arg1: i32, %arg2: i32) -> (i32, i32) {
    %c0_i32 = arith.constant 0 : i32
    %c0_i32_0 = arith.constant 0 : i32
    return %c0_i32, %arg1 : i32, i32
  }
  func.func @transform_3(%arg0: i32, %arg1: i32, %arg2: i32) -> (i32, i32) {
    %c0_i32 = arith.constant 0 : i32
    return %arg0, %arg1 : i32, i32
  }
}

</mosaic_0001>

<bundles_post_ra>
// kernel: tpu_custom_call.1
= control target key start
LH: loop header
LB: loop body
LE: loop exit
PB: predicated region body
PF: predicated region fallthrough
CT: control target
= control target key end

     0   :  { %8 = vsyncpa [#allocation4], 0  ;;  %s388_s0 = inlined_call_operand.hbm [shape: f32[16,32], index: 0, kind: input, shape index: {}]   ;;  %s389_s1 = inlined_call_operand.hbm [shape: f32[32,32], index: 1, kind: input, shape index: {}]   ;;  %s390_s2 = inlined_call_operand.vmem [shape: f32[1,32], index: 2, kind: input, shape index: {}]   ;;  %s391_s3 = inlined_call_operand.hbm [shape: f32[16,32], index: 3, kind: output, shape index: {}]  }
   0x1   :  { %9 = vsyncpa [#allocation7], 0 }
   0x2   :  { %10 = vsyncpa [#allocation5], 0  ;;  %s304_s12 = smov [#allocation3]   ;;  %s232_s16 = scalar_lea.hbm %s388_s0, 256 }
   0x3   :  { %s16_s13 = sshll.u32 %s304_s12, 4  ;;  %p233_p0 = scmp.ne.s32.totalorder %s388_s0, %s232_s16  ;;  %s17_s13 = int_to_ptr.vmem [resolvable:$true] %s16_s13 }
   0x4   :  { %p236_p1 = scmp.lt.u32.totalorder %s232_s16, %s388_s0 }
   0x6   :  { %p238_p2 = pnand %p236_p1, %p233_p0 }
   0x8   :  { %241 = shalt.err (!%p238_p2)
}
   0x9   :  { %s242_s21 = scalar_lea.vmem %s17_s13, 256  ;;  %p247_p4 = scmp.lt.s32.totalorder %s17_s13, %s17_s13 }
   0xa   :  { %p243_p3 = scmp.ne.s32.totalorder %s17_s13, %s242_s21  ;;  %p248_p5 = scmp.lt.s32.totalorder %s242_s21, %s242_s21 }
   0xc   :  { %p249_p6 = por %p248_p5, %p247_p4 }
   0xe   :  { %p250_p7 = pnand %p249_p6, %p243_p3 }
  0x10   :  { %253 = shalt.err (!%p250_p7)
}
  0x11   :  { %s305_s22 = smov 128   ;;  %s306_s23 = smov 8  }
  0x12   :  { %22 = dma.hbm_to_vmem [thread:$0]  %s388_s0, 256, %s17_s13, [#allocation4], %s305_s22, %s305_s22, %s306_s23  }
  0x13   :  { %s307_s26 = smov [#allocation6]   ;;  %s254_s30 = scalar_lea.hbm %s389_s1, 512 }
  0x14   :  { %s28_s27 = sshll.u32 %s307_s26, 4  ;;  %p255_p8 = scmp.ne.s32.totalorder %s389_s1, %s254_s30  ;;  %s29_s27 = int_to_ptr.vmem [resolvable:$true] %s28_s27 }
  0x15   :  { %p258_p9 = scmp.lt.u32.totalorder %s254_s30, %s389_s1 }
  0x17   :  { %p260_p10 = pnand %p258_p9, %p255_p8 }
  0x19   :  { %263 = shalt.err (!%p260_p10)
}
  0x1a   :  { %s264_s8 = scalar_lea.vmem %s29_s27, 512  ;;  %p269_p12 = scmp.lt.s32.totalorder %s29_s27, %s29_s27 }
  0x1b   :  { %p265_p11 = scmp.ne.s32.totalorder %s29_s27, %s264_s8  ;;  %p270_p13 = scmp.lt.s32.totalorder %s264_s8, %s264_s8 }
  0x1d   :  { %p271_p0 = por %p270_p13, %p269_p12 }
  0x1f   :  { %p272_p1 = pnand %p271_p0, %p265_p11 }
  0x21   :  { %275 = shalt.err (!%p272_p1)
}
  0x22   :  { %34 = dma.hbm_to_vmem [thread:$0]  %s389_s1, 512, %s29_s27, [#allocation7], %s305_s22, %s305_s22, %s306_s23  }
  0x23   :  { %298 = dma.done.wait [#allocation4], 256  }
  0x24   :  { %299 = vsyncadd [#allocation4], 4294967040 }
  0x25   :  { %300 = dma.done.wait [#allocation7], 512  }
  0x26   :  { %301 = vsyncadd [#allocation7], 4294966784  ;;  %vm47_vm0 = vcmask 261120   ;;  %v308_v0 = vmov 0.0   ;;  %v54_v1 = vld [vmem:[#allocation6] sm:$0xff]  ;;  %v55_v2 = vld [vmem:[#allocation6 + $0x8] sm:$0xff] }
  0x27   :  { %49 = vst.msk [vmem:[#allocation2 + $0x8] sm:$0xff] %vm47_vm0, %v308_v0  ;;  %48 = vst.msk [vmem:[#allocation2] sm:$0xff] %vm47_vm0, %v308_v0  ;;  %v56_v3 = vld [vmem:[#allocation6 + $0x10] sm:$0xff]  ;;  %v214_v4 = vpack.c.bf16 %v55_v2, %v54_v1  ;;  %v57_v5 = vld [vmem:[#allocation6 + $0x18] sm:$0xff]  ;;  %s309_s11 = smov [#allocation8]  }
  0x28   :  { %vm215_vm1 = vmpackc.low %vm47_vm0, %vm47_vm0  ;;  %v52_v6 = vld [vmem:[#allocation3] sm:$0xff]  ;;  %v220_v7 = vpack.c.bf16 %v57_v5, %v56_v3  ;;  %v53_v8 = vld [vmem:[#allocation3 + $0x8] sm:$0xff]  ;;  %s177_s12 = sshll.u32 %s309_s11, 4  ;;  %s178_s12 = int_to_ptr.vmem [resolvable:$true] %s177_s12 }
  0x29   :  { %211 = vmatprep.mubr.msk.f32.mxu0 %vm47_vm0, %v52_v6  ;;  %216 = vmatprep.subr.msk.bf16.mxu0 %vm215_vm1, %v214_v4  ;;  %v196_v15 = vld [vmem:[%s390_s2] ss:$0 sm:$0xff]  ;;  %s276_s13 = scalar_lea.vmem %s178_s12, 256  ;;  %p281_p3 = scmp.lt.s32.totalorder %s178_s12, %s178_s12 }
  0x2a   :  { %219 = vmatpush3.bf16.xpose.msk.msra.mxu0 %vm215_vm1, %v214_v4  ;;  %p277_p2 = scmp.ne.s32.totalorder %s178_s12, %s276_s13  ;;  %p282_p4 = scmp.lt.s32.totalorder %s276_s13, %s276_s13 }
  0x2b   :  { %222 = vmatprep.subr.msk.bf16.mxu0 %vm215_vm1, %v220_v7 }
  0x2c   :  { %p283_p5 = por %p282_p4, %p281_p3 }
  0x2e   :  { %v51_v9 = vld [vmem:[#allocation2 + $0x8] sm:$0xff]  ;;  %v50_v10 = vld [vmem:[#allocation2] sm:$0xff]  ;;  %p284_p6 = pnand %p283_p5, %p277_p2 }
  0x32   :  { %225 = vmatpush3.bf16.xpose.msk.msra.mxu0 %vm215_vm1, %v220_v7 }
  0x39   :  { %212 = vmatmul.mubr.msk.f32.vlgmr.msra.gmra.mrb[0].mxu0 %vm47_vm0, %v53_v8 }
 0x10c   :  { %v213_v11 = vpop.f32.mrb[0].mxu0 }
 0x10d   :  { %v153_v12 = vadd.f32 %v213_v11, %v51_v9  ;;  %v143_v13 = vpop.f32.mrb[1].mxu0 }
 0x10e   :  { %v152_v14 = vadd.f32 %v143_v13, %v50_v10 }
 0x10f   :  { %155 = vst.msk [vmem:[#allocation2 + $0x8] sm:$0xff] %vm47_vm0, %v153_v12 }
 0x110   :  { %154 = vst.msk [vmem:[#allocation2] sm:$0xff] %vm47_vm0, %v152_v14 }
 0x116   :  { %v160_v16 = vld [vmem:[#allocation2 + $0x8] sm:$0xff] }
 0x117   :  { %v159_v17 = vld [vmem:[#allocation2] sm:$0xff]  ;;  %v169_v18 = vadd.f32 %v196_v15, %v160_v16 }
 0x118   :  { %v168_v19 = vadd.f32 %v196_v15, %v159_v17 }
 0x119   :  { %171 = vst.msk [vmem:[#allocation8 + $0x8] sm:$0xff] %vm47_vm0, %v169_v18 }
 0x11a   :  { %170 = vst.msk [vmem:[#allocation8] sm:$0xff] %vm47_vm0, %v168_v19 }
 0x11b   :  { %287 = shalt.err (!%p284_p6)
}
 0x11c   :  { %s288_s15 = scalar_lea.hbm %s391_s3, 256 }
 0x11d   :  { %p289_p7 = scmp.ne.s32.totalorder %s391_s3, %s288_s15  ;;  %p292_p8 = scmp.lt.u32.totalorder %s288_s15, %s391_s3 }
 0x11f   :  { %p294_p9 = pnand %p292_p8, %p289_p7 }
 0x121   :  { %297 = shalt.err (!%p294_p9)
}
 0x122   :  { %183 = dma.vmem_to_hbm [thread:$0]  %s178_s12, 256, %s391_s3, [#allocation5], %s305_s22, %s305_s22, %s306_s23  }
 0x123   :  { %302 = dma.done.wait [#allocation5], 256  }
 0x124   :  { %303 = vsyncadd [#allocation5], 4294967040 }
 0x125   :  { %187 = vsyncpa [#allocation4], 1 }
 0x126   :  { %188 = vsyncpa [#allocation7], 1 }
 0x127   :  { %189 = vsyncpa [#allocation5], 1 }

</bundles_post_ra>
